<compile_context>
chip_gen: v7x
topology: tpu7x:2x2x1
jax: 0.10.0
libtpu: 0.0.40
codegen_flags: <defaults>
</compile_context>

<pallas_src>
import functools

import jax
import jax.numpy as jnp
from jax import lax
from jax.experimental import pallas as pl
from jax.experimental.pallas import tpu as pltpu


def _round_up(v, m):
    return (v + m - 1) // m * m


# --------------------------------------------------------------------------
# Kernels
# --------------------------------------------------------------------------

def _rnn_step_kernel(*refs, alpha, has_back):
    """Single cell step: 2-3 accumulating MXU dots + bias + relu + leaky blend.

    All operands are full-array VMEM blocks (no wrapper-side concat/pad/slice).
    Weights are bf16; activations are cast in-kernel; accumulation stays f32.
    """
    if has_back:
        x_ref, h_ref, b_ref, w_in_ref, w_h_ref, w_b_ref, bias_ref, out_ref = refs
    else:
        x_ref, h_ref, w_in_ref, w_h_ref, bias_ref, out_ref = refs

    h = h_ref[...]
    pre = jnp.dot(x_ref[...].astype(jnp.bfloat16), w_in_ref[...],
                  preferred_element_type=jnp.float32)
    pre = pre + jnp.dot(h.astype(jnp.bfloat16), w_h_ref[...],
                        preferred_element_type=jnp.float32)
    if has_back:
        pre = pre + jnp.dot(b_ref[...].astype(jnp.bfloat16), w_b_ref[...],
                            preferred_element_type=jnp.float32)
    pre = pre + bias_ref[...]
    h_new = jnp.maximum(pre, 0.0)                       # torch.relu
    out_ref[...] = (h + alpha * (h_new - h)).astype(out_ref.dtype)


def _rnn_seq_kernel(xs_ref, bk_ref, w_in_ref, w_b_ref, w_h_ref, bias_ref,
                    h0_ref, out_ref, h_scratch, *, alpha, time_block):
    """Blocked recurrence: grid = (batch_tiles[parallel], time_blocks[arbitrary]).

    One grid step runs `time_block` recurrent steps (fori_loop, fully unrolled).
    W_in / W_b / W_h / bias use constant index maps -> stay resident in VMEM;
    the hidden state is carried across time blocks in a VMEM scratch.
    The non-recurrent projection is computed here (no HBM proj tensor).
    """
    @pl.when(pl.program_id(1) == 0)
    def _():
        h_scratch[...] = h0_ref[...]

    bias = bias_ref[...]                                # hoisted out of the loop

    def step(t, h):
        proj = jnp.dot(xs_ref[t], w_in_ref[...],
                       preferred_element_type=jnp.float32)
        proj = proj + jnp.dot(bk_ref[t], w_b_ref[...],
                              preferred_element_type=jnp.float32)
        pre = proj + bias + jnp.dot(h.astype(w_h_ref.dtype), w_h_ref[...],
                                    preferred_element_type=jnp.float32)
        h_new = jnp.maximum(pre, 0.0)
        h_next = h + alpha * (h_new - h)
        out_ref[t] = h_next.astype(out_ref.dtype)
        return h_next

    h_scratch[...] = lax.fori_loop(0, time_block, step, h_scratch[...],
                                   unroll=True)


# --------------------------------------------------------------------------
# One-time parameter preparation (hoisted out of the per-step path)
# --------------------------------------------------------------------------

def prepare_rnn_core_params(params):
    """Transpose, cast to bf16, fuse biases and pad PyTorch-layout weights ONCE."""
    H, I = params["W_in_weight"].shape              # nn.Linear: (out, in)
    H2, _ = params["W_h_weight"].shape
    H3, Bk = params["W_b_weight"].shape
    assert H == H2 == H3
    Hp = _round_up(H, 128)                          # lane-dense hidden for seq mode

    # Unpadded transposed bf16 weights for the full-array single-step kernel.
    w_in_t = params["W_in_weight"].T.astype(jnp.bfloat16)     # (I, H)
    w_h_t = params["W_h_weight"].T.astype(jnp.bfloat16)       # (H, H)
    w_b_t = params["W_b_weight"].T.astype(jnp.bfloat16)       # (Bk, H)
    bias_full = (params["W_in_bias"] + params["W_h_bias"]
                 + params["W_b_bias"]).reshape(1, H).astype(jnp.float32)
    bias_noback = (params["W_in_bias"]
                   + params["W_h_bias"]).reshape(1, H).astype(jnp.float32)

    # Hp-padded bf16 weights for the sequence kernel (kept resident in VMEM).
    w_in_p = jnp.zeros((I, Hp), jnp.bfloat16).at[:, :H].set(w_in_t)
    w_b_p = jnp.zeros((Bk, Hp), jnp.bfloat16).at[:, :H].set(w_b_t)
    w_h_p = jnp.zeros((Hp, Hp), jnp.bfloat16).at[:H, :H].set(w_h_t)
    bias_p = jnp.zeros((1, Hp), jnp.float32).at[:, :H].set(bias_full)

    return {
        "input_size": I, "hidden_size": H, "back_size": Bk, "H_pad": Hp,
        "w_in_t": w_in_t, "w_h_t": w_h_t, "w_b_t": w_b_t,
        "bias_full": bias_full, "bias_noback": bias_noback,
        "w_in_p": w_in_p, "w_b_p": w_b_p, "w_h_p": w_h_p, "bias_p": bias_p,
    }


# --------------------------------------------------------------------------
# Wrappers
# --------------------------------------------------------------------------

def rnn_core_forward(x, back, hidden, prepped, alpha):
    """Single-step forward (matches RNNCore.forward, incl. back=None branch)."""
    B = x.shape[0]
    H = prepped["hidden_size"]
    if hidden is None:
        hidden = jnp.zeros((B, H), jnp.float32)

    has_back = back is not None
    if has_back:
        args = (x, hidden, back, prepped["w_in_t"], prepped["w_h_t"],
                prepped["w_b_t"], prepped["bias_full"])
    else:
        args = (x, hidden, prepped["w_in_t"], prepped["w_h_t"],
                prepped["bias_noback"])

    def full(a):
        nd = a.ndim
        return pl.BlockSpec(a.shape, lambda: (0,) * nd)

    kernel = functools.partial(_rnn_step_kernel, alpha=float(alpha),
                               has_back=has_back)
    # TODO(synk): for very large H/K add a (parallel N, arbitrary K) grid with an
    # f32 accumulator scratch instead of single full-array blocks.
    return pl.pallas_call(
        kernel,
        out_shape=jax.ShapeDtypeStruct((B, H), jnp.float32),
        grid=(),
        in_specs=[full(a) for a in args],
        out_specs=pl.BlockSpec((B, H), lambda: (0, 0)),
    )(*args)


def rnn_core_sequence(xs, backs, h0, prepped, alpha, *,
                      time_block=8, batch_block=8):
    """Apply the cell over a sequence inside ONE pallas_call.

    xs: (T, B, input), backs: (T, B, back), h0: (B, H) or None.
    Returns hidden state at every step: (T, B, H).
    """
    T, B, I = xs.shape
    Bk = backs.shape[-1]
    H, Hp = prepped["hidden_size"], prepped["H_pad"]
    if h0 is None:
        h0 = jnp.zeros((B, H), jnp.float32)

    Bp = _round_up(max(B, batch_block), batch_block)
    Tp = _round_up(T, time_block)
    nb, nt = Bp // batch_block, Tp // time_block

    # One-time (per sequence) padding/casting; amortized over T steps.
    xs_p = jnp.zeros((Tp, Bp, I), jnp.bfloat16).at[:T, :B].set(
        xs.astype(jnp.bfloat16))
    bk_p = jnp.zeros((Tp, Bp, Bk), jnp.bfloat16).at[:T, :B].set(
        backs.astype(jnp.bfloat16))
    h0_p = jnp.zeros((Bp, Hp), jnp.float32).at[:B, :H].set(
        h0.astype(jnp.float32))

    kernel = functools.partial(_rnn_seq_kernel, alpha=float(alpha),
                               time_block=time_block)

    out = pl.pallas_call(
        kernel,
        out_shape=jax.ShapeDtypeStruct((Tp, Bp, Hp), jnp.float32),
        grid_spec=pltpu.PrefetchScalarGridSpec(
            num_scalar_prefetch=0,
            grid=(nb, nt),
            in_specs=[
                # per-time-block activation tiles, streamed (double-buffered)
                pl.BlockSpec((time_block, batch_block, I),
                             lambda b, t: (t, b, 0)),
                pl.BlockSpec((time_block, batch_block, Bk),
                             lambda b, t: (t, b, 0)),
                # weights / bias: constant index -> stay resident in VMEM
                pl.BlockSpec((I, Hp), lambda b, t: (0, 0)),
                pl.BlockSpec((Bk, Hp), lambda b, t: (0, 0)),
                pl.BlockSpec((Hp, Hp), lambda b, t: (0, 0)),
                pl.BlockSpec((1, Hp), lambda b, t: (0, 0)),
                # initial hidden for this batch tile (read only at t == 0)
                pl.BlockSpec((batch_block, Hp), lambda b, t: (b, 0)),
            ],
            out_specs=pl.BlockSpec((time_block, batch_block, Hp),
                                   lambda b, t: (t, b, 0)),
            scratch_shapes=[pltpu.VMEM((batch_block, Hp), jnp.float32)],
        ),
        compiler_params=pltpu.CompilerParams(
            # batch tiles are independent recurrences (megacore on v7x);
            # time must stay serial.
            dimension_semantics=("parallel", "arbitrary"),
            vmem_limit_bytes=48 * 1024 * 1024,
        ),
    )(xs_p, bk_p, prepped["w_in_p"], prepped["w_b_p"], prepped["w_h_p"],
      prepped["bias_p"], h0_p)
    return out[:T, :B, :H]


# --------------------------------------------------------------------------
# Pure-JAX references and synthetic params
# --------------------------------------------------------------------------

def init_params(key, input_size, hidden_size, back_size):
    ks = jax.random.split(key, 6)

    def lin(kw, kb, out_f, in_f):
        bound = 1.0 / jnp.sqrt(in_f)
        w = jax.random.uniform(kw, (out_f, in_f), jnp.float32, -bound, bound)
        b = jax.random.uniform(kb, (out_f,), jnp.float32, -bound, bound)
        return w, b

    w_in, b_in = lin(ks[0], ks[1], hidden_size, input_size)
    w_h, b_h = lin(ks[2], ks[3], hidden_size, hidden_size)
    w_b, b_b = lin(ks[4], ks[5], hidden_size, back_size)
    return {
        "W_in_weight": w_in, "W_in_bias": b_in,
        "W_h_weight": w_h, "W_h_bias": b_h,
        "W_b_weight": w_b, "W_b_bias": b_b,
    }


def rnn_core_reference(x, back, hidden, params, alpha):
    pre = (x @ params["W_in_weight"].T + params["W_in_bias"]
           + hidden @ params["W_h_weight"].T + params["W_h_bias"])
    if back is not None:
        pre = pre + back @ params["W_b_weight"].T + params["W_b_bias"]
    h_new = jnp.maximum(pre, 0.0)
    return (1.0 - alpha) * hidden + alpha * h_new


def rnn_seq_reference(xs, backs, h0, params, alpha):
    def step(h, xb):
        x, bk = xb
        h_next = rnn_core_reference(x, bk, h, params, alpha)
        return h_next, h_next
    _, hs = jax.lax.scan(step, h0, (xs, backs))
    return hs


# --------------------------------------------------------------------------

if __name__ == "__main__":
    key = jax.random.PRNGKey(0)
    k_p, k_x, k_b, k_h, k_xs, k_bs = jax.random.split(key, 6)

    batch = 4
    input_size = 16
    back_size = 8
    hidden_size = 32
    seq_len = 6
    tau, dt = 10.0, 1.0
    alpha = dt / tau

    params = init_params(k_p, input_size, hidden_size, back_size)
    prepped = prepare_rnn_core_params(params)   # one-time weight prep (bf16)

    # ------------------ single-step forward ------------------
    x = jax.random.normal(k_x, (batch, input_size), jnp.float32)
    back = jax.random.normal(k_b, (batch, back_size), jnp.float32)
    hidden = jax.random.normal(k_h, (batch, hidden_size), jnp.float32)

    out = rnn_core_forward(x, back, hidden, prepped, alpha)
    jax.block_until_ready(out)
    ref = rnn_core_reference(x, back, hidden, params, alpha)
    assert out.shape == (batch, hidden_size)
    assert jnp.allclose(out, ref, atol=2e-2, rtol=2e-2), "step mismatch"

    # hidden=None path (zeros init, batch from x)
    out0 = rnn_core_forward(x, back, None, prepped, alpha)
    jax.block_until_ready(out0)
    ref0 = rnn_core_reference(x, back, jnp.zeros((batch, hidden_size)),
                              params, alpha)
    assert jnp.allclose(out0, ref0, atol=2e-2, rtol=2e-2), "zero-h mismatch"

    # back=None path (W_b / b_b dropped, as in the PyTorch module)
    outnb = rnn_core_forward(x, None, hidden, prepped, alpha)
    jax.block_until_ready(outnb)
    refnb = rnn_core_reference(x, None, hidden, params, alpha)
    assert jnp.allclose(outnb, refnb, atol=2e-2, rtol=2e-2), "no-back mismatch"

    # ------------------ sequence forward (recurrence inside one kernel) -----
    xs = jax.random.normal(k_xs, (seq_len, batch, input_size), jnp.float32)
    backs = jax.random.normal(k_bs, (seq_len, batch, back_size), jnp.float32)

    hs = rnn_core_sequence(xs, backs, hidden, prepped, alpha)
    jax.block_until_ready(hs)
    hs_ref = rnn_seq_reference(xs, backs, hidden, params, alpha)
    assert hs.shape == (seq_len, batch, hidden_size)
    assert jnp.allclose(hs, hs_ref, atol=5e-2, rtol=5e-2), "sequence mismatch"

    print("KERNEL_OK")
</pallas_src>

<mosaic_0001>
module attributes {stable_mosaic.version = 11 : i64} {
  func.func @_rnn_step_kernel(%arg0: memref<4x16xf32, #tpu.memory_space<vmem>>, %arg1: memref<4x32xf32, #tpu.memory_space<vmem>>, %arg2: memref<4x8xf32, #tpu.memory_space<vmem>>, %arg3: memref<16x32xbf16, #tpu.memory_space<vmem>>, %arg4: memref<32x32xbf16, #tpu.memory_space<vmem>>, %arg5: memref<8x32xbf16, #tpu.memory_space<vmem>>, %arg6: memref<1x32xf32, #tpu.memory_space<vmem>>, %arg7: memref<4x32xf32, #tpu.memory_space<vmem>>) attributes {dimension_semantics = [], scalar_prefetch = 0 : i64, scratch_operands = 0 : i64, tpu.core_type = #tpu.core_type<tc>} {
    %c0 = arith.constant 0 : index
    %c0_0 = arith.constant 0 : index
    %0 = vector.load %arg1[%c0, %c0_0] : memref<4x32xf32, #tpu.memory_space<vmem>>, vector<4x32xf32>
    %c0_1 = arith.constant 0 : index
    %c0_2 = arith.constant 0 : index
    %1 = vector.load %arg0[%c0_1, %c0_2] : memref<4x16xf32, #tpu.memory_space<vmem>>, vector<4x16xf32>
    %2 = arith.truncf %1 : vector<4x16xf32> to vector<4x16xbf16>
    %c0_3 = arith.constant 0 : index
    %c0_4 = arith.constant 0 : index
    %3 = vector.load %arg3[%c0_3, %c0_4] : memref<16x32xbf16, #tpu.memory_space<vmem>>, vector<16x32xbf16>
    %cst = arith.constant dense<0.000000e+00> : vector<4x32xf32>
    %4 = tpu.matmul %2, %3, %cst {dimension_numbers = #tpu.dot_dimension_numbers<[1], [0], [0], [1], [0, 0, 1, 1], [], []>} : vector<4x16xbf16>, vector<16x32xbf16>, vector<4x32xf32> -> vector<4x32xf32>
    %5 = arith.truncf %0 : vector<4x32xf32> to vector<4x32xbf16>
    %c0_5 = arith.constant 0 : index
    %c0_6 = arith.constant 0 : index
    %6 = vector.load %arg4[%c0_5, %c0_6] : memref<32x32xbf16, #tpu.memory_space<vmem>>, vector<32x32xbf16>
    %cst_7 = arith.constant dense<0.000000e+00> : vector<4x32xf32>
    %7 = tpu.matmul %5, %6, %cst_7 {dimension_numbers = #tpu.dot_dimension_numbers<[1], [0], [0], [1], [0, 0, 1, 1], [], []>} : vector<4x32xbf16>, vector<32x32xbf16>, vector<4x32xf32> -> vector<4x32xf32>
    %8 = arith.addf %4, %7 : vector<4x32xf32>
    %c0_8 = arith.constant 0 : index
    %c0_9 = arith.constant 0 : index
    %9 = vector.load %arg2[%c0_8, %c0_9] : memref<4x8xf32, #tpu.memory_space<vmem>>, vector<4x8xf32>
    %10 = arith.truncf %9 : vector<4x8xf32> to vector<4x8xbf16>
    %c0_10 = arith.constant 0 : index
    %c0_11 = arith.constant 0 : index
    %11 = vector.load %arg5[%c0_10, %c0_11] : memref<8x32xbf16, #tpu.memory_space<vmem>>, vector<8x32xbf16>
    %cst_12 = arith.constant dense<0.000000e+00> : vector<4x32xf32>
    %12 = tpu.matmul %10, %11, %cst_12 {dimension_numbers = #tpu.dot_dimension_numbers<[1], [0], [0], [1], [0, 0, 1, 1], [], []>} : vector<4x8xbf16>, vector<8x32xbf16>, vector<4x32xf32> -> vector<4x32xf32>
    %13 = arith.addf %8, %12 : vector<4x32xf32>
    %c0_13 = arith.constant 0 : index
    %c0_14 = arith.constant 0 : index
    %14 = vector.load %arg6[%c0_13, %c0_14] : memref<1x32xf32, #tpu.memory_space<vmem>>, vector<1x32xf32>
    %15 = vector.broadcast %14 : vector<1x32xf32> to vector<4x32xf32>
    %16 = arith.addf %13, %15 : vector<4x32xf32>
    %cst_15 = arith.constant 0.000000e+00 : f32
    %17 = vector.broadcast %cst_15 : f32 to vector<4x32xf32>
    %18 = arith.maximumf %16, %17 : vector<4x32xf32>
    %19 = arith.subf %18, %0 : vector<4x32xf32>
    %cst_16 = arith.constant 1.000000e-01 : f32
    %20 = vector.broadcast %cst_16 : f32 to vector<4x32xf32>
    %21 = arith.mulf %20, %19 : vector<4x32xf32>
    %22 = arith.addf %0, %21 : vector<4x32xf32>
    %c0_17 = arith.constant 0 : index
    %c0_18 = arith.constant 0 : index
    %23 = vector.load %arg7[%c0_17, %c0_18] : memref<4x32xf32, #tpu.memory_space<vmem>>, vector<4x32xf32>
    tpu.vector_store %arg7[%c0_17, %c0_18], %22 {strides = array<i32>} : memref<4x32xf32, #tpu.memory_space<vmem>>, vector<4x32xf32>,
    return
  }
}

</mosaic_0001>

<bundles_post_ra>
// kernel: tpu_custom_call.1
= control target key start
LH: loop header
LB: loop body
LE: loop exit
PB: predicated region body
PF: predicated region fallthrough
CT: control target
= control target key end

     0   :  { %12 = vsyncpa [#allocation3], 0  ;;  %s568_s0 = inlined_call_operand.hbm [shape: f32[4,16], index: 0, kind: input, shape index: {}]   ;;  %s569_s1 = inlined_call_operand.hbm [shape: f32[4,32], index: 1, kind: input, shape index: {}]   ;;  %s570_s2 = inlined_call_operand.hbm [shape: f32[4,8], index: 2, kind: input, shape index: {}]   ;;  %s571_s3 = inlined_call_operand.vmem [shape: bf16[16,32], index: 3, kind: input, shape index: {}]   ;;  %s572_s4 = inlined_call_operand.hbm [shape: bf16[32,32], index: 4, kind: input, shape index: {}]   ;;  %s573_s5 = inlined_call_operand.vmem [shape: bf16[8,32], index: 5, kind: input, shape index: {}]   ;;  %s574_s6 = inlined_call_operand.vmem [shape: f32[1,32], index: 6, kind: input, shape index: {}]   ;;  %s575_s7 = inlined_call_operand.hbm [shape: f32[4,32], index: 7, kind: output, shape index: {}]  }
   0x1   :  { %13 = vsyncpa [#allocation6], 0 }
   0x2   :  { %14 = vsyncpa [#allocation9], 0 }
   0x3   :  { %15 = vsyncpa [#allocation4], 0  ;;  %s440_s24 = smov [#allocation5]   ;;  %s441_s26 = smov [#allocation2]  }
   0x4   :  { %s32_s25 = sshll.u32 %s440_s24, 4  ;;  %s22_s27 = sshll.u32 %s441_s26, 4  ;;  %s33_s25 = int_to_ptr.vmem [resolvable:$true] %s32_s25  ;;  %s23_s27 = int_to_ptr.vmem [resolvable:$true] %s22_s27 }
   0x5   :  { %s322_s30 = scalar_lea.hbm %s569_s1, 64 }
   0x6   :  { %p323_p0 = scmp.ne.s32.totalorder %s569_s1, %s322_s30  ;;  %p326_p1 = scmp.lt.u32.totalorder %s322_s30, %s569_s1 }
   0x8   :  { %p328_p2 = pnand %p326_p1, %p323_p0 }
   0xa   :  { %331 = shalt.err (!%p328_p2)
}
   0xb   :  { %s332_s12 = scalar_lea.vmem %s33_s25, 64  ;;  %p337_p4 = scmp.lt.s32.totalorder %s33_s25, %s33_s25 }
   0xc   :  { %p333_p3 = scmp.ne.s32.totalorder %s33_s25, %s332_s12  ;;  %p338_p5 = scmp.lt.s32.totalorder %s332_s12, %s332_s12 }
   0xe   :  { %p339_p6 = por %p338_p5, %p337_p4 }
  0x10   :  { %p340_p7 = pnand %p339_p6, %p333_p3 }
  0x12   :  { %343 = shalt.err (!%p340_p7)
}
  0x13   :  { %35 = dma.hbm_to_vmem [thread:$0]  %s569_s1, 64, %s33_s25, [#allocation6]  }
  0x14   :  { %s344_s17 = scalar_lea.hbm %s568_s0, 64 }
  0x15   :  { %p345_p8 = scmp.ne.s32.totalorder %s568_s0, %s344_s17  ;;  %p348_p9 = scmp.lt.u32.totalorder %s344_s17, %s568_s0 }
  0x17   :  { %p350_p10 = pnand %p348_p9, %p345_p8 }
  0x19   :  { %353 = shalt.err (!%p350_p10)
}
  0x1a   :  { %s354_s22 = scalar_lea.vmem %s23_s27, 64  ;;  %p359_p12 = scmp.lt.s32.totalorder %s23_s27, %s23_s27 }
  0x1b   :  { %p355_p11 = scmp.ne.s32.totalorder %s23_s27, %s354_s22  ;;  %p360_p13 = scmp.lt.s32.totalorder %s354_s22, %s354_s22 }
  0x1d   :  { %p361_p0 = por %p360_p13, %p359_p12 }
  0x1f   :  { %p362_p1 = pnand %p361_p0, %p355_p11 }
  0x21   :  { %365 = shalt.err (!%p362_p1)
}
  0x22   :  { %25 = dma.hbm_to_vmem [thread:$0]  %s568_s0, 64, %s23_s27, [#allocation3]  }
  0x23   :  { %s442_s24 = smov [#allocation7]   ;;  %s443_s26 = smov [#allocation8]  }
  0x24   :  { %s42_s25 = sshll.u32 %s442_s24, 4  ;;  %s53_s28 = sshll.u32 %s443_s26, 4  ;;  %s43_s25 = int_to_ptr.vmem [resolvable:$true] %s42_s25  ;;  %s513_s28 = int_to_ptr.vmem [resolvable:$true] %s53_s28 }
  0x25   :  { %s366_s8 = scalar_lea.hbm %s570_s2, 64 }
  0x26   :  { %p367_p2 = scmp.ne.s32.totalorder %s570_s2, %s366_s8  ;;  %p370_p3 = scmp.lt.u32.totalorder %s366_s8, %s570_s2 }
  0x28   :  { %p372_p4 = pnand %p370_p3, %p367_p2 }
  0x2a   :  { %375 = shalt.err (!%p372_p4)
}
  0x2b   :  { %s376_s0 = scalar_lea.vmem %s43_s25, 64  ;;  %p381_p6 = scmp.lt.s32.totalorder %s43_s25, %s43_s25 }
  0x2c   :  { %p377_p5 = scmp.ne.s32.totalorder %s43_s25, %s376_s0  ;;  %p382_p7 = scmp.lt.s32.totalorder %s376_s0, %s376_s0 }
  0x2e   :  { %p383_p8 = por %p382_p7, %p381_p6 }
  0x30   :  { %p384_p9 = pnand %p383_p8, %p377_p5 }
  0x32   :  { %387 = shalt.err (!%p384_p9)
}
  0x33   :  { %45 = dma.hbm_to_vmem [thread:$0]  %s570_s2, 64, %s43_s25, [#allocation6]  }
  0x34   :  { %s388_s16 = scalar_lea.hbm %s572_s4, 256 }
  0x35   :  { %p389_p10 = scmp.ne.s32.totalorder %s572_s4, %s388_s16  ;;  %p392_p11 = scmp.lt.u32.totalorder %s388_s16, %s572_s4 }
  0x37   :  { %p394_p12 = pnand %p392_p11, %p389_p10 }
  0x39   :  { %397 = shalt.err (!%p394_p12)
}
  0x3a   :  { %s398_s21 = scalar_lea.vmem %s513_s28, 256  ;;  %p403_p0 = scmp.lt.s32.totalorder %s513_s28, %s513_s28 }
  0x3b   :  { %p399_p13 = scmp.ne.s32.totalorder %s513_s28, %s398_s21  ;;  %p404_p1 = scmp.lt.s32.totalorder %s398_s21, %s398_s21 }
  0x3d   :  { %p405_p2 = por %p404_p1, %p403_p0 }
  0x3f   :  { %p406_p3 = pnand %p405_p2, %p399_p13 }
  0x41   :  { %409 = shalt.err (!%p406_p3)
}
  0x42   :  { %s444_s2 = smov 64   ;;  %s445_s22 = smov 4  }
  0x43   :  { %59 = dma.hbm_to_vmem [thread:$0]  %s572_s4, 256, %s513_s28, [#allocation9], %s444_s2, %s444_s2, %s445_s22  }
  0x44   :  { %432 = dma.done.wait [#allocation3], 64  }
  0x45   :  { %433 = vsyncadd [#allocation3], 4294967232 }
  0x46   :  { %434 = dma.done.wait [#allocation6], 128  }
  0x47   :  { %435 = vsyncadd [#allocation6], 4294967168 }
  0x48   :  { %436 = dma.done.wait [#allocation9], 256  }
  0x49   :  { %437 = vsyncadd [#allocation9], 4294967040  ;;  %v446_v0 = vmov 0.0   ;;  %vm447_vm0 = vmmov 0   ;;  %v319_v1 = vld [vmem:[#allocation8] sm:$0xff]   ;;  %v320_v2 = vld [vmem:[%s571_s3] sm:$0xff]  }
  0x4a   :  { %290 = vmatprep.subr.bf16.mxu0 %v446_v0  ;;  %298 = vmatprep.subr.bf16.mxu1 %v446_v0  ;;  %vm200_vm1 = vcmask 1043456   ;;  %v78_v3 = vld [vmem:[#allocation2] sm:$0xf]  ;;  %vm149_vm2 = vcmask 130048   ;;  %v321_v5 = vld [vmem:[#allocation8 + $0x8] sm:$0xff]   ;;  %vm99_vm3 = vcmask 261120  }
  0x4b   :  { %300 = vmatprep.mubr.msk.bf16.mxu1 %vm447_vm0, %v446_v0  ;;  %294 = vmatprep.mubr.msk.bf16.mxu0 %vm447_vm0, %v446_v0  ;;  %v79_v4 = vpack.c.bf16 %v78_v3, %v78_v3  ;;  %v195_v6 = vld [vmem:[%s573_s5] sm:$0xf]  ;;  %v77_v7 = vld [vmem:[#allocation5] sm:$0xf]  ;;  %v193_v10 = vld [vmem:[#allocation7] sm:$0xf] }
  0x4c   :  { %291 = vmatpush3.bf16.msra.mxu0 %v319_v1  ;;  %299 = vmatpush3.bf16.msra.mxu1 %v320_v2  ;;  %v202_v8 = vsel %vm200_vm1, %v195_v6, 0  ;;  %v82_v9 = vpack.c.bf16 %v77_v7, %v77_v7  ;;  %v194_v11 = vpack.c.bf16 %v193_v10, %v193_v10  ;;  %vm196_vm4 = vcmask 64512   ;;  %v282_v22 = vld [vmem:[%s574_s6] ss:$0 sm:$0xff]  ;;  %s448_s28 = smov [#allocation10]  }
  0x4d   :  { %292 = vmatprep.subr.bf16.mxu0 %v446_v0  ;;  %304 = vmatprep.subr.bf16.mxu1 %v446_v0  ;;  %s265_s29 = sshll.u32 %s448_s28, 4  ;;  %vm257_vm5 = vcmask 257024   ;;  %s266_s29 = int_to_ptr.vmem [resolvable:$true] %s265_s29 }
  0x4e   :  { %s410_s30 = scalar_lea.vmem %s266_s29, 64  ;;  %p415_p5 = scmp.lt.s32.totalorder %s266_s29, %s266_s29 }
  0x4f   :  { %301 = vmatmul.mubr.msk.bf16.vlgmr.msra.gmra.mrb[0].mxu1 %vm149_vm2, %v79_v4  ;;  %p411_p4 = scmp.ne.s32.totalorder %s266_s29, %s410_s30  ;;  %p416_p6 = scmp.lt.s32.totalorder %s410_s30, %s410_s30 }
  0x50   :  { %293 = vmatpush3.bf16.msra.mxu0 %v321_v5  ;;  %305 = vmatpush3.bf16.msra.mxu1 %v202_v8 }
  0x51   :  { %306 = vmatprep.mubr.msk.bf16.mxu1 %vm447_vm0, %v446_v0  ;;  %p417_p7 = por %p416_p6, %p415_p5 }
  0x53   :  { %295 = vmatmul.mubr.msk.bf16.vlgmr.msra.gmra.mrb[0].mxu0 %vm99_vm3, %v82_v9  ;;  %p418_p8 = pnand %p417_p7, %p411_p4 }
  0x57   :  { %307 = vmatmul.mubr.msk.bf16.vlgmr.msra.gmra.mrb[4].mxu1 %vm196_vm4, %v194_v11 }
 0x122   :  { %v187_v12 = vpop.f32.mrb[0].mxu1 }
 0x123   :  { %v302_v13 = vpop.f32.mrb[1].mxu1 }
 0x124   :  { %v190_v14 = vpop.f32.mrb[2].mxu1 }
 0x125   :  { %v303_v15 = vpop.f32.mrb[3].mxu1 }
 0x126   :  { %v137_v16 = vpop.f32.mrb[0].mxu0 }
 0x127   :  { %v188_v17 = vadd.f32 %v187_v12, %v137_v16  ;;  %v296_v18 = vpop.f32.mrb[1].mxu0 }
 0x128   :  { %v140_v19 = vpop.f32.mrb[2].mxu0 }
 0x129   :  { %v297_v20 = vpop.f32.mrb[3].mxu0 }
 0x12a   :  { %v238_v21 = vpop.f32.mrb[4].mxu1 }
 0x12b   :  { %v244_v23 = vadd.f32 %v238_v21, %v188_v17  ;;  %v308_v24 = vpop.f32.mrb[5].mxu1 }
 0x12c   :  { %v241_v25 = vpop.f32.mrb[6].mxu1 }
 0x12d   :  { %v252_v26 = vadd.f32 %v282_v22, %v244_v23  ;;  %v309_v27 = vpop.f32.mrb[7].mxu1 }
 0x12f   :  { %v253_v28 = vmax.f32 %v252_v26, 0.0 }
 0x131   :  { %v254_v29 = vsub.f32 %v253_v28, %v77_v7 }
 0x133   :  { %v255_v30 = vmul.f32 0.1, %v254_v29 }
 0x135   :  { %v256_v31 = vadd.f32 %v255_v30, %v77_v7 }
 0x137   :  { %258 = vst.msk [vmem:[#allocation10] sm:$0xf] %vm257_vm5, %v256_v31 }
 0x138   :  { %421 = shalt.err (!%p418_p8)
}
 0x139   :  { %s422_s9 = scalar_lea.hbm %s575_s7, 64 }
 0x13a   :  { %p423_p9 = scmp.ne.s32.totalorder %s575_s7, %s422_s9  ;;  %p426_p10 = scmp.lt.u32.totalorder %s422_s9, %s575_s7 }
 0x13c   :  { %p428_p11 = pnand %p426_p10, %p423_p9 }
 0x13e   :  { %431 = shalt.err (!%p428_p11)
}
 0x13f   :  { %268 = dma.vmem_to_hbm [thread:$0]  %s266_s29, 64, %s575_s7, [#allocation4]  }
 0x140   :  { %438 = dma.done.wait [#allocation4], 64  }
 0x141   :  { %439 = vsyncadd [#allocation4], 4294967232 }
 0x142   :  { %272 = vsyncpa [#allocation3], 1 }
 0x143   :  { %273 = vsyncpa [#allocation6], 1 }
 0x144   :  { %274 = vsyncpa [#allocation9], 1 }
 0x145   :  { %275 = vsyncpa [#allocation4], 1 }

</bundles_post_ra>
